<compile_context>
chip_gen: v6e
topology: v6e:2x2x1
jax: 0.10.0
libtpu: 0.0.40
codegen_flags: <defaults>
</compile_context>

<pallas_src>
import jax
import jax.numpy as jnp
from jax.experimental import pallas as pl
from jax.experimental.pallas import tpu as pltpu


def _round_up(x, m):
    return ((x + m - 1) // m) * m


def action_encoder_kernel(x_ref, w1_ref, b1_ref, w2_ref, b2_ref,
                          w3_ref, b3_ref, o_ref):
    # x tile arrives in its original (f32) dtype; any bf16 operand cast for
    # the MXU happens here in-register, not as a wrapper-side HBM pass.
    x = x_ref[...].astype(w1_ref.dtype)
    # Layer 1: (tb, A) @ (A, Hp) + (1, Hp) -> relu   (f32 MXU accumulation,
    # f32 bias/ReLU on the VPU — v5e-safe since the v5e VPU lacks bf16).
    h = jnp.dot(x, w1_ref[...], preferred_element_type=jnp.float32) + b1_ref[...]
    h = jnp.maximum(h, 0.0)
    # Layer 2: (tb, Hp) @ (Hp, Hp) + (1, Hp) -> relu
    h = jnp.dot(h.astype(w2_ref.dtype), w2_ref[...],
                preferred_element_type=jnp.float32) + b2_ref[...]
    h = jnp.maximum(h, 0.0)
    # Layer 3: (tb, Hp) @ (Hp, L) + (1, L)   (no activation)
    mu = jnp.dot(h.astype(w3_ref.dtype), w3_ref[...],
                 preferred_element_type=jnp.float32) + b3_ref[...]
    o_ref[...] = mu.astype(o_ref.dtype)


def prepare_params(params, *, compute_dtype=jnp.float32):
    """One-time parameter preparation (call at init, NOT per forward).

    Pads the hidden dim to a multiple of 128 lanes (keeps intermediate
    activations and W2 lane-dense) and casts weights to the matmul operand
    dtype.  Input (A) and output (L) feature dims stay UNPADDED — trailing
    block dims equal to the full array dim are legal, and not padding them
    avoids inflating the x read / mu write.  bf16 operands are fine on
    v5e/v6e/v7x; biases stay f32 (bias/ReLU run in f32 on the VPU).
    """
    w1, w2, w3 = params["w1"], params["w2"], params["w3"]
    b1, b2, b3 = params["b1"], params["b2"], params["b3"]
    A, H = w1.shape
    L = w3.shape[1]
    Hp = _round_up(H, 128)

    pad2 = lambda a, r, c: jnp.pad(a, ((0, r - a.shape[0]), (0, c - a.shape[1])))
    return dict(
        w1=pad2(w1, A, Hp).astype(compute_dtype),
        b1=pad2(b1, 1, Hp).astype(jnp.float32),
        w2=pad2(w2, Hp, Hp).astype(compute_dtype),
        b2=pad2(b2, 1, Hp).astype(jnp.float32),
        w3=pad2(w3, Hp, L).astype(compute_dtype),
        b3=b3.astype(jnp.float32),
        dims=(A, H, L, Hp),
    )


def _default_grid_steps():
    # One big batch tile per TensorCore: v5e/v6e have 1 TC per chip, v7x has 2.
    try:
        kind = jax.devices()[0].device_kind.lower()
    except Exception:
        return 2
    if "v5" in kind or "v6" in kind:
        return 1
    return 2


def action_encoder_forward(x, prep, *, block_b=None, grid_steps=None,
                           out_dtype=jnp.float32, single_buffer_weights=False):
    """Deterministic ActionEncoder forward.

    x:    (B, action_dim) float32
    prep: output of prepare_params(params, compute_dtype=...)
    Returns (mu, None, None), matching the PyTorch module (deterministic=True).
    """
    A, H, L, Hp = prep["dims"]
    B, Ax = x.shape
    assert Ax == A, f"expected action_dim={A}, got {Ax}"

    if grid_steps is None:
        grid_steps = _default_grid_steps()

    # Batch tile: one big tile per TensorCore, multiple of 8 sublanes, capped
    # at 1024 rows (a few MiB of VMEM even double-buffered — fine on all gens).
    if block_b is None:
        tb = min(1024, _round_up(pl.cdiv(_round_up(B, 8), grid_steps), 8))
    else:
        tb = block_b
    assert tb % 8 == 0, "batch tile must be a multiple of 8 sublanes"
    Bp = _round_up(B, tb)
    if Bp != B:
        x = jnp.pad(x, ((0, Bp - B), (0, 0)))

    grid = (Bp // tb,)
    full = lambda i: (0, 0)  # weights / biases: grid-invariant (resident) block

    if single_buffer_weights:
        # Grid-invariant operands do not need double-buffering (v7x VMEM slack).
        wspec = lambda shape: pl.BlockSpec(shape, full, pipeline_mode=pl.Buffered(1))
    else:
        wspec = lambda shape: pl.BlockSpec(shape, full)

    w_itemsize = jnp.dtype(prep["w1"].dtype).itemsize
    cost = pl.CostEstimate(
        flops=2 * Bp * (A * Hp + Hp * Hp + Hp * L),
        transcendentals=0,
        bytes_accessed=(4 * Bp * A
                        + w_itemsize * (A * Hp + Hp * Hp + Hp * L)
                        + 4 * (2 * Hp + L)
                        + jnp.dtype(out_dtype).itemsize * Bp * L),
    )

    mu = pl.pallas_call(
        action_encoder_kernel,
        out_shape=jax.ShapeDtypeStruct((Bp, L), out_dtype),
        grid_spec=pltpu.PrefetchScalarGridSpec(
            num_scalar_prefetch=0,
            grid=grid,
            in_specs=[
                pl.BlockSpec((tb, A), lambda i: (i, 0)),  # x: batch-tiled, A unpadded
                wspec((A, Hp)),    # W1
                wspec((1, Hp)),    # b1
                wspec((Hp, Hp)),   # W2
                wspec((1, Hp)),    # b2
                wspec((Hp, L)),    # W3 (output dim unpadded)
                wspec((1, L)),     # b3
            ],
            out_specs=pl.BlockSpec((tb, L), lambda i: (i, 0)),
        ),
        compiler_params=pltpu.CompilerParams(
            dimension_semantics=("parallel",)),
        cost_estimate=cost,
    )(x, prep["w1"], prep["b1"], prep["w2"], prep["b2"], prep["w3"], prep["b3"])

    if Bp != B:
        mu = mu[:B]

    # TODO(synk): non-deterministic branch (log_sigma MLP + reparameterization
    # with randn) not implemented; the module defaults to deterministic=True.
    return mu, None, None


def init_params(key, action_dim, act_rep_dim, hidden_dim):
    """PyTorch-Linear-style uniform init (weights stored transposed)."""
    def linear(k, fan_in, fan_out):
        k1, k2 = jax.random.split(k)
        bound = 1.0 / jnp.sqrt(fan_in)
        w = jax.random.uniform(k1, (fan_in, fan_out), jnp.float32, -bound, bound)
        b = jax.random.uniform(k2, (1, fan_out), jnp.float32, -bound, bound)
        return w, b

    k1, k2, k3 = jax.random.split(key, 3)
    w1, b1 = linear(k1, action_dim, hidden_dim)
    w2, b2 = linear(k2, hidden_dim, hidden_dim)
    w3, b3 = linear(k3, hidden_dim, act_rep_dim)
    return dict(w1=w1, b1=b1, w2=w2, b2=b2, w3=w3, b3=b3)


def reference_forward(x, p):
    h = jnp.maximum(x @ p["w1"] + p["b1"], 0.0)
    h = jnp.maximum(h @ p["w2"] + p["b2"], 0.0)
    return h @ p["w3"] + p["b3"]


if __name__ == "__main__":
    # Shapes implied by the module: action_dim=16, hidden_dim=32, act_rep_dim=8.
    # batch=512 exercises the batch tiling (1 big tile on v5e/v6e, 2 on v7x).
    B, ACTION_DIM, HIDDEN_DIM, ACT_REP_DIM = 512, 16, 32, 8

    key = jax.random.PRNGKey(0)
    kx, kp = jax.random.split(key)
    x = jax.random.normal(kx, (B, ACTION_DIM), jnp.float32)
    params = init_params(kp, ACTION_DIM, ACT_REP_DIM, HIDDEN_DIM)
    ref = reference_forward(x, params)

    # f32 operand path (tight tolerance vs reference)
    prep_f32 = prepare_params(params, compute_dtype=jnp.float32)
    mu, log_sigma, z = action_encoder_forward(x, prep_f32)
    mu = jax.block_until_ready(mu)
    assert mu.shape == (B, ACT_REP_DIM)
    assert log_sigma is None and z is None
    assert jnp.allclose(mu, ref, atol=1e-4, rtol=1e-4)

    # bf16 operand path (recommended on all gens: halves x/weight DMA bytes;
    # f32 accumulation + f32 bias/ReLU; activations are quantized to bf16).
    prep_bf16 = prepare_params(params, compute_dtype=jnp.bfloat16)
    mu_bf16, _, _ = action_encoder_forward(x, prep_bf16)
    mu_bf16 = jax.block_until_ready(mu_bf16)
    assert jnp.allclose(mu_bf16, ref, atol=1e-1, rtol=1e-1)

    print("KERNEL_OK")
</pallas_src>

<mosaic_0001>
module attributes {stable_mosaic.version = 11 : i64} {
  func.func @action_encoder_kernel(%arg0: i32, %arg1: memref<256x16xf32, #tpu.memory_space<vmem>>, %arg2: memref<16x128xf32, #tpu.memory_space<vmem>>, %arg3: memref<1x128xf32, #tpu.memory_space<vmem>>, %arg4: memref<128x128xf32, #tpu.memory_space<vmem>>, %arg5: memref<1x128xf32, #tpu.memory_space<vmem>>, %arg6: memref<128x8xf32, #tpu.memory_space<vmem>>, %arg7: memref<1x8xf32, #tpu.memory_space<vmem>>, %arg8: memref<256x8xf32, #tpu.memory_space<vmem>>) attributes {dimension_semantics = [#tpu.dimension_semantics<parallel>], iteration_bounds = array<i64: 2>, scalar_prefetch = 0 : i64, scratch_operands = 0 : i64, tpu.core_type = #tpu.core_type<tc>, window_params = [{transform_indices = @transform_0, window_bounds = array<i64: 256, 16>}, {pipeline_mode = #tpu.pipeline_mode<synchronous>, transform_indices = @transform_1, window_bounds = array<i64: 16, 128>}, {pipeline_mode = #tpu.pipeline_mode<synchronous>, transform_indices = @transform_2, window_bounds = array<i64: 1, 128>}, {pipeline_mode = #tpu.pipeline_mode<synchronous>, transform_indices = @transform_3, window_bounds = array<i64: 128, 128>}, {pipeline_mode = #tpu.pipeline_mode<synchronous>, transform_indices = @transform_4, window_bounds = array<i64: 1, 128>}, {pipeline_mode = #tpu.pipeline_mode<synchronous>, transform_indices = @transform_5, window_bounds = array<i64: 128, 8>}, {pipeline_mode = #tpu.pipeline_mode<synchronous>, transform_indices = @transform_6, window_bounds = array<i64: 1, 8>}, {transform_indices = @transform_7, window_bounds = array<i64: 256, 8>}]} {
    %c0 = arith.constant 0 : index
    %c0_0 = arith.constant 0 : index
    %0 = vector.load %arg1[%c0, %c0_0] : memref<256x16xf32, #tpu.memory_space<vmem>>, vector<256x16xf32>
    %c0_1 = arith.constant 0 : index
    %c0_2 = arith.constant 0 : index
    %1 = vector.load %arg2[%c0_1, %c0_2] : memref<16x128xf32, #tpu.memory_space<vmem>>, vector<16x128xf32>
    %cst = arith.constant dense<0.000000e+00> : vector<256x128xf32>
    %2 = tpu.matmul %0, %1, %cst {dimension_numbers = #tpu.dot_dimension_numbers<[1], [0], [0], [1], [0, 0, 1, 1], [], []>} : vector<256x16xf32>, vector<16x128xf32>, vector<256x128xf32> -> vector<256x128xf32>
    %c0_3 = arith.constant 0 : index
    %c0_4 = arith.constant 0 : index
    %3 = vector.load %arg3[%c0_3, %c0_4] : memref<1x128xf32, #tpu.memory_space<vmem>>, vector<1x128xf32>
    %4 = vector.broadcast %3 : vector<1x128xf32> to vector<256x128xf32>
    %5 = arith.addf %2, %4 : vector<256x128xf32>
    %cst_5 = arith.constant 0.000000e+00 : f32
    %6 = vector.broadcast %cst_5 : f32 to vector<256x128xf32>
    %7 = arith.maximumf %5, %6 : vector<256x128xf32>
    %c0_6 = arith.constant 0 : index
    %c0_7 = arith.constant 0 : index
    %8 = vector.load %arg4[%c0_6, %c0_7] : memref<128x128xf32, #tpu.memory_space<vmem>>, vector<128x128xf32>
    %cst_8 = arith.constant dense<0.000000e+00> : vector<256x128xf32>
    %9 = tpu.matmul %7, %8, %cst_8 {dimension_numbers = #tpu.dot_dimension_numbers<[1], [0], [0], [1], [0, 0, 1, 1], [], []>} : vector<256x128xf32>, vector<128x128xf32>, vector<256x128xf32> -> vector<256x128xf32>
    %c0_9 = arith.constant 0 : index
    %c0_10 = arith.constant 0 : index
    %10 = vector.load %arg5[%c0_9, %c0_10] : memref<1x128xf32, #tpu.memory_space<vmem>>, vector<1x128xf32>
    %11 = vector.broadcast %10 : vector<1x128xf32> to vector<256x128xf32>
    %12 = arith.addf %9, %11 : vector<256x128xf32>
    %cst_11 = arith.constant 0.000000e+00 : f32
    %13 = vector.broadcast %cst_11 : f32 to vector<256x128xf32>
    %14 = arith.maximumf %12, %13 : vector<256x128xf32>
    %c0_12 = arith.constant 0 : index
    %c0_13 = arith.constant 0 : index
    %15 = vector.load %arg6[%c0_12, %c0_13] : memref<128x8xf32, #tpu.memory_space<vmem>>, vector<128x8xf32>
    %cst_14 = arith.constant dense<0.000000e+00> : vector<256x8xf32>
    %16 = tpu.matmul %14, %15, %cst_14 {dimension_numbers = #tpu.dot_dimension_numbers<[1], [0], [0], [1], [0, 0, 1, 1], [], []>} : vector<256x128xf32>, vector<128x8xf32>, vector<256x8xf32> -> vector<256x8xf32>
    %c0_15 = arith.constant 0 : index
    %c0_16 = arith.constant 0 : index
    %17 = vector.load %arg7[%c0_15, %c0_16] : memref<1x8xf32, #tpu.memory_space<vmem>>, vector<1x8xf32>
    %18 = vector.broadcast %17 : vector<1x8xf32> to vector<256x8xf32>
    %19 = arith.addf %16, %18 : vector<256x8xf32>
    %c0_17 = arith.constant 0 : index
    %c0_18 = arith.constant 0 : index
    %20 = vector.load %arg8[%c0_17, %c0_18] : memref<256x8xf32, #tpu.memory_space<vmem>>, vector<256x8xf32>
    tpu.vector_store %arg8[%c0_17, %c0_18], %19 {strides = array<i32>} : memref<256x8xf32, #tpu.memory_space<vmem>>, vector<256x8xf32>,
    return
  }
  func.func @transform_0(%arg0: i32) -> (i32, i32) {
    %c0_i32 = arith.constant 0 : i32
    %c0_i32_0 = arith.constant 0 : i32
    return %arg0, %c0_i32 : i32, i32
  }
  func.func @transform_1(%arg0: i32) -> (i32, i32) {
    %c0_i32 = arith.constant 0 : i32
    %c0_i32_0 = arith.constant 0 : i32
    %c0_i32_1 = arith.constant 0 : i32
    return %c0_i32, %c0_i32_0 : i32, i32
  }
  func.func @transform_2(%arg0: i32) -> (i32, i32) {
    %c0_i32 = arith.constant 0 : i32
    %c0_i32_0 = arith.constant 0 : i32
    %c0_i32_1 = arith.constant 0 : i32
    return %c0_i32, %c0_i32_0 : i32, i32
  }
  func.func @transform_3(%arg0: i32) -> (i32, i32) {
    %c0_i32 = arith.constant 0 : i32
    %c0_i32_0 = arith.constant 0 : i32
    %c0_i32_1 = arith.constant 0 : i32
    return %c0_i32, %c0_i32_0 : i32, i32
  }
  func.func @transform_4(%arg0: i32) -> (i32, i32) {
    %c0_i32 = arith.constant 0 : i32
    %c0_i32_0 = arith.constant 0 : i32
    %c0_i32_1 = arith.constant 0 : i32
    return %c0_i32, %c0_i32_0 : i32, i32
  }
  func.func @transform_5(%arg0: i32) -> (i32, i32) {
    %c0_i32 = arith.constant 0 : i32
    %c0_i32_0 = arith.constant 0 : i32
    %c0_i32_1 = arith.constant 0 : i32
    return %c0_i32, %c0_i32_0 : i32, i32
  }
  func.func @transform_6(%arg0: i32) -> (i32, i32) {
    %c0_i32 = arith.constant 0 : i32
    %c0_i32_0 = arith.constant 0 : i32
    %c0_i32_1 = arith.constant 0 : i32
    return %c0_i32, %c0_i32_0 : i32, i32
  }
  func.func @transform_7(%arg0: i32) -> (i32, i32) {
    %c0_i32 = arith.constant 0 : i32
    %c0_i32_0 = arith.constant 0 : i32
    return %arg0, %c0_i32 : i32, i32
  }
}

</mosaic_0001>

<bundles_post_ra>
// kernel: tpu_custom_call.1
= control target key start
LH: loop header
LB: loop body
LE: loop exit
PB: predicated region body
PF: predicated region fallthrough
CT: control target
= control target key end

     0   :  { %s1742_s24 = smov 0   ;;  %s2120_s0 = inlined_call_operand.vmem [shape: f32[512,16], index: 0, kind: input, shape index: {}]   ;;  %s2121_s1 = inlined_call_operand.vmem [shape: f32[16,128], index: 1, kind: input, shape index: {}]   ;;  %s2122_s2 = inlined_call_operand.vmem [shape: f32[1,128], index: 2, kind: input, shape index: {}]   ;;  %s2123_s3 = inlined_call_operand.vmem [shape: f32[128,128], index: 3, kind: input, shape index: {}]   ;;  %s2124_s4 = inlined_call_operand.vmem [shape: f32[1,128], index: 4, kind: input, shape index: {}]   ;;  %s2125_s5 = inlined_call_operand.vmem [shape: f32[128,8], index: 5, kind: input, shape index: {}]   ;;  %s2126_s6 = inlined_call_operand.vmem [shape: f32[1,8], index: 6, kind: input, shape index: {}]   ;;  %s2127_s7 = inlined_call_operand.vmem [shape: f32[512,8], index: 7, kind: output, shape index: {}]  }
   0x1 LB: > { %s1294_s25 = sadd.s32 4294967295, %s1700_s24   ;;  %p1298_p0 = scmp.ge.s32.totalorder %s1700_s24, 1  ;;  %s1700_s24 = sphi %s1742_s24, %s17_s24  }
   0x2   : > { %p238_p1 = scmp.lt.s32.totalorder %s1700_s24, 3 }
   0x4   : > { %p239_p2 = pnand %p1298_p0, %p238_p1 }
   0x5   : > { %s1299_s30 = sshll.u32 (!%p239_p2), %s1294_s25, 5 }
   0x6   : > { %242 = sbr.rel (%p239_p2) target bundleno = 675 (0x2a3), region = 48  ;;  %p271_p3 = scmp.lt.s32.totalorder (!%p239_p2), %s1299_s30, 63 }
   0xb   : > { %v315_v0 = vld [vmem:[%s2121_s1 + $0x8] sm:$0xff]  ;;  %v314_v1 = vld [vmem:[%s2121_s1] sm:$0xff]  ;;  %v692_v2 = vld [vmem:[%s2123_s3 + $0x78] sm:$0xff]  ;;  %s2129_s30 = smov (!%p271_p3, %s1299_s30), 63  ;;  %vm323_vm0 = vcmask 130048   ;;  %vm1205_vm1 = vcmask 64512  }
   0xc   : > { %1470 = vmatprep.subr.mxu0 %v315_v0  ;;  %1682 = vmatprep.subr.mxu1 %v315_v0  ;;  %s1300_s10 = sshll.u32 %s2129_s30, 3  ;;  %v691_v11 = vld [vmem:[%s2123_s3 + $0x70] sm:$0xff]  ;;  %v690_v16 = vld [vmem:[%s2123_s3 + $0x68] sm:$0xff]  ;;  %v689_v18 = vld [vmem:[%s2123_s3 + $0x60] sm:$0xff] }
   0xd   : > { %1471 = vmatpush3.msra.mxu0 %v315_v0  ;;  %1684 = vmatpush3.msra.mxu1 %v315_v0  ;;  %s1767_s13 = scalar_lea.vmem %s2120_s0, %s1300_s10  ;;  %v688_v22 = vld [vmem:[%s2123_s3 + $0x58] sm:$0xff]  ;;  %v687_v27 = vld [vmem:[%s2123_s3 + $0x50] sm:$0xff]  ;;  %v686_v29 = vld [vmem:[%s2123_s3 + $0x48] sm:$0xff]  ;;  %s2019_s25 = scalar_lea.vmem %s2127_s7, %s1300_s10 }
   0xe   : > { %1472 = vmatprep.subr.mxu0 %v314_v1  ;;  %1683 = vmatprep.subr.mxu1 %v314_v1  ;;  %v282_v3 = vld [vmem:[%s1767_s13] sm:$0xff]  ;;  %v283_v4 = vld [vmem:[%s1767_s13 + $0x8] sm:$0xff]  ;;  %v284_v5 = vld [vmem:[%s1767_s13 + $0x10] sm:$0xff] }
   0xf   : > { %1473 = vmatpush3.msra.mxu0 %v314_v1  ;;  %1685 = vmatpush3.msra.mxu1 %v314_v1  ;;  %v285_v6 = vld [vmem:[%s1767_s13 + $0x18] sm:$0xff]  ;;  %v286_v7 = vld [vmem:[%s1767_s13 + $0x20] sm:$0xff]  ;;  %v299_v9 = vld [vmem:[%s1767_s13 + $0x88] sm:$0xff] }
  0x10   : > { %1522 = vmatprep.subr.mxu1 %v692_v2  ;;  %1474 = vmatprep.mubr.msk.f32.mxu0 %vm323_vm0, %v282_v3  ;;  %v298_v8 = vld [vmem:[%s1767_s13 + $0x80] sm:$0xff]  ;;  %v300_v10 = vld [vmem:[%s1767_s13 + $0x90] sm:$0xff]  ;;  %v287_v12 = vld [vmem:[%s1767_s13 + $0x28] sm:$0xff] }
  0x11   : > { %1475 = vmatmul.mubr.msk.f32.vlgmr.msra.gmra.mxu0 %vm323_vm0, %v283_v4  ;;  %1498 = vmatprep.mubr.msk.f32.mxu1 %vm323_vm0, %v298_v8  ;;  %v288_v13 = vld [vmem:[%s1767_s13 + $0x30] sm:$0xff]  ;;  %v301_v14 = vld [vmem:[%s1767_s13 + $0x98] sm:$0xff]  ;;  %v302_v15 = vld [vmem:[%s1767_s13 + $0xa0] sm:$0xff] }
  0x12   : > { %1477 = vmatprep.mubr.msk.f32.mxu0 %vm323_vm0, %v284_v5  ;;  %1499 = vmatmul.mubr.msk.f32.vlgmr.msra.gmra.mxu1 %vm323_vm0, %v299_v9  ;;  %v289_v17 = vld [vmem:[%s1767_s13 + $0x38] sm:$0xff]  ;;  %v290_v19 = vld [vmem:[%s1767_s13 + $0x40] sm:$0xff]  ;;  %v303_v20 = vld [vmem:[%s1767_s13 + $0xa8] sm:$0xff] }
  0x13   : > { %1501 = vmatprep.mubr.msk.f32.mxu1 %vm323_vm0, %v300_v10  ;;  %1523 = vmatpush3.msra.mxu1 %v692_v2  ;;  %v304_v21 = vld [vmem:[%s1767_s13 + $0xb0] sm:$0xff]  ;;  %v291_v23 = vld [vmem:[%s1767_s13 + $0x48] sm:$0xff]  ;;  %v305_v25 = vld [vmem:[%s1767_s13 + $0xb8] sm:$0xff] }
  0x14   : > { %1524 = vmatprep.subr.mxu1 %v691_v11  ;;  %v292_v24 = vld [vmem:[%s1767_s13 + $0x50] sm:$0xff]  ;;  %v306_v26 = vld [vmem:[%s1767_s13 + $0xc0] sm:$0xff]  ;;  %v293_v28 = vld [vmem:[%s1767_s13 + $0x58] sm:$0xff] }
  0x15   : > { %1478 = vmatmul.mubr.msk.f32.gmra.mxu0 %vm323_vm0, %v285_v6  ;;  %1525 = vmatpush3.msra.mxu1 %v691_v11  ;;  %v294_v30 = vld [vmem:[%s1767_s13 + $0x60] sm:$0xff]  ;;  %v307_v31 = vld [vmem:[%s1767_s13 + $0xc8] sm:$0xff]  ;;  %v308_v32 = vld [vmem:[%s1767_s13 + $0xd0] sm:$0xff] }
  0x16   : > { %1480 = vmatprep.mubr.msk.f32.mxu0 %vm323_vm0, %v286_v7  ;;  %1502 = vmatmul.mubr.msk.f32.gmra.mxu1 %vm323_vm0, %v301_v14  ;;  %v685_v33 = vld [vmem:[%s2123_s3 + $0x40] sm:$0xff]  ;;  %v295_v34 = vld [vmem:[%s1767_s13 + $0x68] sm:$0xff]  ;;  %v296_v35 = vld [vmem:[%s1767_s13 + $0x70] sm:$0xff] }
  0x17   : > { %1504 = vmatprep.mubr.msk.f32.mxu1 %vm323_vm0, %v302_v15  ;;  %1526 = vmatprep.subr.mxu1 %v690_v16  ;;  %v309_v36 = vld [vmem:[%s1767_s13 + $0xd8] sm:$0xff]  ;;  %v310_v37 = vld [vmem:[%s1767_s13 + $0xe0] sm:$0xff]  ;;  %v683_v40 = vld [vmem:[%s2123_s3 + $0x30] sm:$0xff] }
  0x18   : > { %1527 = vmatpush3.msra.mxu1 %v690_v16  ;;  %v684_v38 = vld [vmem:[%s2123_s3 + $0x38] sm:$0xff]  ;;  %v311_v41 = vld [vmem:[%s1767_s13 + $0xe8] sm:$0xff]  ;;  %v312_v42 = vld [vmem:[%s1767_s13 + $0xf0] sm:$0xff] }
  0x19   : > { %1481 = vmatmul.mubr.msk.f32.gmra.mxu0 %vm323_vm0, %v287_v12  ;;  %1528 = vmatprep.subr.mxu1 %v689_v18  ;;  %v297_v39 = vld [vmem:[%s1767_s13 + $0x78] sm:$0xff]  ;;  %v682_v43 = vld [vmem:[%s2123_s3 + $0x28] sm:$0xff]  ;;  %v681_v45 = vld [vmem:[%s2123_s3 + $0x20] sm:$0xff] }
  0x1a   : > { %1483 = vmatprep.mubr.msk.f32.mxu0 %vm323_vm0, %v288_v13  ;;  %1505 = vmatmul.mubr.msk.f32.gmra.mxu1 %vm323_vm0, %v303_v20  ;;  %v313_v44 = vld [vmem:[%s1767_s13 + $0xf8] sm:$0xff]  ;;  %v679_v47 = vld [vmem:[%s2123_s3 + $0x10] sm:$0xff]  ;;  %v678_v48 = vld [vmem:[%s2123_s3 + $0x8] sm:$0xff] }
  0x1b   : > { %1507 = vmatprep.mubr.msk.f32.mxu1 %vm323_vm0, %v304_v21  ;;  %1529 = vmatpush3.msra.mxu1 %v689_v18  ;;  %v680_v46 = vld [vmem:[%s2123_s3 + $0x18] sm:$0xff]  ;;  %v677_v49 = vld [vmem:[%s2123_s3] sm:$0xff]  ;;  %v971_v51 = vld [vmem:[%s2125_s5 + $0x70] sm:$0xff] }
  0x1c   : > { %1530 = vmatprep.subr.mxu1 %v688_v22  ;;  %v972_v50 = vld [vmem:[%s2125_s5 + $0x78] sm:$0xff]  ;;  %v970_v52 = vld [vmem:[%s2125_s5 + $0x68] sm:$0xff]  ;;  %v969_v53 = vld [vmem:[%s2125_s5 + $0x60] sm:$0xff] }
  0x1d   : > { %1484 = vmatmul.mubr.msk.f32.gmra.mxu0 %vm323_vm0, %v289_v17  ;;  %1531 = vmatpush3.msra.mxu1 %v688_v22  ;;  %v968_v54 = vld [vmem:[%s2125_s5 + $0x58] sm:$0xff]  ;;  %v967_v55 = vld [vmem:[%s2125_s5 + $0x50] sm:$0xff]  ;;  %v966_v56 = vld [vmem:[%s2125_s5 + $0x48] sm:$0xff] }
  0x1e   : > { %1486 = vmatprep.mubr.msk.f32.mxu0 %vm323_vm0, %v290_v19  ;;  %1508 = vmatmul.mubr.msk.f32.gmra.mxu1 %vm323_vm0, %v305_v25  ;;  %v965_v57 = vld [vmem:[%s2125_s5 + $0x40] sm:$0xff]  ;;  %v964_v58 = vld [vmem:[%s2125_s5 + $0x38] sm:$0xff]  ;;  %v963_v59 = vld [vmem:[%s2125_s5 + $0x30] sm:$0xff] }
  0x1f   : > { %1510 = vmatprep.mubr.msk.f32.mxu1 %vm323_vm0, %v306_v26  ;;  %1532 = vmatprep.subr.mxu1 %v687_v27  ;;  %v962_v60 = vld [vmem:[%s2125_s5 + $0x28] sm:$0xff]  ;;  %v961_v61 = vld [vmem:[%s2125_s5 + $0x20] sm:$0xff]  ;;  %v960_v62 = vld [vmem:[%s2125_s5 + $0x18] sm:$0xff] }
  0x20   : > { %1533 = vmatpush3.msra.mxu1 %v687_v27  ;;  %1602 = vmatprep.subr.mxu0 %v972_v50  ;;  %v1920_v63 = vld [vmem:[%s2122_s2] ss:$0 sm:$0xff] }
  0x21   : > { %1487 = vmatmul.mubr.msk.f32.gmra.mxu0 %vm323_vm0, %v291_v23  ;;  %1534 = vmatprep.subr.mxu1 %v686_v29 }
  0x22   : > { %1489 = vmatprep.mubr.msk.f32.mxu0 %vm323_vm0, %v292_v24  ;;  %1511 = vmatmul.mubr.msk.f32.gmra.mxu1 %vm323_vm0, %v307_v31 }
  0x23   : > { %1513 = vmatprep.mubr.msk.f32.mxu1 %vm323_vm0, %v308_v32  ;;  %1535 = vmatpush3.msra.mxu1 %v686_v29 }
  0x24   : > { %1536 = vmatprep.subr.mxu1 %v685_v33  ;;  %1603 = vmatpush3.msra.mxu0 %v972_v50 }
  0x25   : > { %1490 = vmatmul.mubr.msk.f32.gmra.mxu0 %vm323_vm0, %v293_v28  ;;  %1537 = vmatpush3.msra.mxu1 %v685_v33 }
  0x26   : > { %1492 = vmatprep.mubr.msk.f32.mxu0 %vm323_vm0, %v294_v30  ;;  %1514 = vmatmul.mubr.msk.f32.gmra.mxu1 %vm323_vm0, %v309_v36 }
  0x27   : > { %1516 = vmatprep.mubr.msk.f32.mxu1 %vm323_vm0, %v310_v37  ;;  %1538 = vmatprep.subr.mxu1 %v684_v38 }
  0x28   : > { %1539 = vmatpush3.msra.mxu1 %v684_v38  ;;  %1604 = vmatprep.subr.mxu0 %v971_v51 }
  0x29   : > { %1493 = vmatmul.mubr.msk.f32.gmra.mxu0 %vm323_vm0, %v295_v34  ;;  %1540 = vmatprep.subr.mxu1 %v683_v40 }
  0x2a   : > { %1495 = vmatprep.mubr.msk.f32.mxu0 %vm323_vm0, %v296_v35  ;;  %1517 = vmatmul.mubr.msk.f32.gmra.mxu1 %vm323_vm0, %v311_v41 }
  0x2b   : > { %1519 = vmatprep.mubr.msk.f32.mxu1 %vm323_vm0, %v312_v42  ;;  %1541 = vmatpush3.msra.mxu1 %v683_v40 }
  0x2c   : > { %1542 = vmatprep.subr.mxu1 %v682_v43  ;;  %1605 = vmatpush3.msra.mxu0 %v971_v51 }
  0x2d   : > { %1496 = vmatmul.mubr.msk.f32.gmra.mxu0 %vm323_vm0, %v297_v39  ;;  %1543 = vmatpush3.msra.mxu1 %v682_v43 }
  0x2e   : > { %1520 = vmatmul.mubr.msk.f32.gmra.mxu1 %vm323_vm0, %v313_v44  ;;  %1544 = vmatprep.subr.mxu1 %v681_v45 }
  0x2f   : > { %1545 = vmatpush3.msra.mxu1 %v681_v45  ;;  %1606 = vmatprep.subr.mxu0 %v970_v52 }
  0x30   : > { %1546 = vmatprep.subr.mxu1 %v680_v46  ;;  %1607 = vmatpush3.msra.mxu0 %v970_v52 }
  0x31   : > { %1547 = vmatpush3.msra.mxu1 %v680_v46  ;;  %1608 = vmatprep.subr.mxu0 %v969_v53 }
  0x32   : > { %1548 = vmatprep.subr.mxu1 %v679_v47  ;;  %1609 = vmatpush3.msra.mxu0 %v969_v53 }
  0x33   : > { %1549 = vmatpush3.msra.mxu1 %v679_v47  ;;  %1610 = vmatprep.subr.mxu0 %v968_v54 }
  0x34   : > { %1550 = vmatprep.subr.mxu1 %v678_v48  ;;  %1611 = vmatpush3.msra.mxu0 %v968_v54 }
  0x35   : > { %1551 = vmatpush3.msra.mxu1 %v678_v48  ;;  %1612 = vmatprep.subr.mxu0 %v967_v55 }
  0x36   : > { %1552 = vmatprep.subr.mxu1 %v677_v49  ;;  %1613 = vmatpush3.msra.mxu0 %v967_v55 }
  0x37   : > { %1553 = vmatpush3.msra.mxu1 %v677_v49  ;;  %1614 = vmatprep.subr.mxu0 %v966_v56 }
  0x38   : > { %1615 = vmatpush3.msra.mxu0 %v966_v56 }
  0x39   : > { %1616 = vmatprep.subr.mxu0 %v965_v57 }
  0x3a   : > { %1617 = vmatpush3.msra.mxu0 %v965_v57 }
  0x3b   : > { %1618 = vmatprep.subr.mxu0 %v964_v58 }
  0x3c   : > { %1619 = vmatpush3.msra.mxu0 %v964_v58 }
  0x3d   : > { %1620 = vmatprep.subr.mxu0 %v963_v59 }
  0x3e   : > { %1621 = vmatpush3.msra.mxu0 %v963_v59 }
  0x3f   : > { %1622 = vmatprep.subr.mxu0 %v962_v60 }
  0x40   : > { %1623 = vmatpush3.msra.mxu0 %v962_v60 }
  0x41   : > { %1624 = vmatprep.subr.mxu0 %v961_v61 }
  0x42   : > { %1625 = vmatpush3.msra.mxu0 %v961_v61 }
  0x43   : > { %1626 = vmatprep.subr.mxu0 %v960_v62 }
  0x44   : > { %1627 = vmatpush3.msra.mxu0 %v960_v62 }
  0xd1   : > { %v1476_v0 = vpop.f32.mrf.mxu0 }
  0xd2   : > { %v492_v1 = vadd.f32 %v1476_v0, %v1920_v63  ;;  %v1924_v6 = vpop.f32.mrf.mxu1 }
  0xd3   : > { %v486_v2 = vpop.f32.mrf.mxu0  ;;  %v572_v61 = vadd.f32 %v1924_v6, %v1920_v63 }
  0xd4   : > { %v487_v3 = vadd.f32 %v1920_v63, %v486_v2  ;;  %v646_v7 = vmax.f32 %v492_v1, 0.0  ;;  %v566_v11 = vpop.f32.mrf.mxu1 }
  0xd5   : > { %v1479_v4 = vpop.f32.mrf.mxu0  ;;  %v567_v51 = vadd.f32 %v1920_v63, %v566_v11  ;;  %v662_v2 = vmax.f32 %v572_v61, 0.0 }
  0xd6   : > { %v645_v5 = vmax.f32 %v487_v3, 0.0  ;;  %v502_v8 = vadd.f32 %v1479_v4, %v1920_v63  ;;  %v1928_v14 = vpop.f32.mrf.mxu1 }
  0xd7   : > { %v496_v9 = vpop.f32.mrf.mxu0  ;;  %v661_v58 = vmax.f32 %v567_v51, 0.0  ;;  %v582_v3 = vadd.f32 %v1928_v14, %v1920_v63 }
  0xd8   : > { %v497_v10 = vadd.f32 %v1920_v63, %v496_v9  ;;  %1554 = vmatprep.mubr.f32.mxu1 %v645_v5  ;;  %v648_v15 = vmax.f32 %v502_v8, 0.0  ;;  %v576_v19 = vpop.f32.mrf.mxu1 }
  0xd9   : > { %v1482_v12 = vpop.f32.mrf.mxu0  ;;  %1555 = vmatmul.mubr.f32.vlgmr.msra.gmra.mxu1 %v646_v7  ;;  %v577_v59 = vadd.f32 %v1920_v63, %v576_v19  ;;  %v664_v8 = vmax.f32 %v582_v3, 0.0 }
  0xda   : > { %v647_v13 = vmax.f32 %v497_v10, 0.0  ;;  %v512_v16 = vadd.f32 %v1482_v12, %v1920_v63  ;;  %v1932_v22 = vpop.f32.mrf.mxu1 }
  0xdb   : > { %v506_v17 = vpop.f32.mrf.mxu0  ;;  %v663_v0 = vmax.f32 %v577_v59, 0.0  ;;  %v592_v6 = vadd.f32 %v1932_v22, %v1920_v63 }
  0xdc   : > { %v507_v18 = vadd.f32 %v1920_v63, %v506_v17  ;;  %1557 = vmatprep.mubr.f32.mxu1 %v647_v13  ;;  %v650_v23 = vmax.f32 %v512_v16, 0.0  ;;  %v586_v27 = vpop.f32.mrf.mxu1 }
  0xdd   : > { %v1485_v20 = vpop.f32.mrf.mxu0  ;;  %1558 = vmatmul.mubr.f32.gmra.mxu1 %v648_v15  ;;  %v587_v1 = vadd.f32 %v1920_v63, %v586_v27  ;;  %v666_v12 = vmax.f32 %v592_v6, 0.0 }
  0xde   : > { %v649_v21 = vmax.f32 %v507_v18, 0.0  ;;  %v522_v24 = vadd.f32 %v1485_v20, %v1920_v63  ;;  %v1509_v33 = vpop.f32.mrf.mxu1 }
  0xdf   : > { %v516_v25 = vpop.f32.mrf.mxu0  ;;  %v665_v5 = vmax.f32 %v587_v1, 0.0  ;;  %v602_v13 = vadd.f32 %v1509_v33, %v1920_v63  ;;  %v959_v33 = vld [vmem:[%s2125_s5 + $0x10] sm:$0xff] }
  0xe0   : > { %v517_v26 = vadd.f32 %v1920_v63, %v516_v25  ;;  %1560 = vmatprep.mubr.f32.mxu1 %v649_v21  ;;  %v652_v30 = vmax.f32 %v522_v24, 0.0  ;;  %v596_v40 = vpop.f32.mrf.mxu1  ;;  %1628 = vmatprep.subr.mxu0 %v959_v33 }
  0xe1   : > { %v1488_v28 = vpop.f32.mrf.mxu0  ;;  %1561 = vmatmul.mubr.f32.gmra.mxu1 %v650_v23  ;;  %v597_v7 = vadd.f32 %v1920_v63, %v596_v40  ;;  %v668_v17 = vmax.f32 %v602_v13, 0.0  ;;  %1629 = vmatpush3.msra.mxu0 %v959_v33 }
  0xe2   : > { %v651_v29 = vmax.f32 %v517_v26, 0.0  ;;  %v532_v31 = vadd.f32 %v1488_v28, %v1920_v63  ;;  %v1512_v47 = vpop.f32.mrf.mxu1 }
  0xe3   : > { %v526_v32 = vpop.f32.mrf.mxu0  ;;  %v667_v10 = vmax.f32 %v597_v7, 0.0  ;;  %v612_v18 = vadd.f32 %v1512_v47, %v1920_v63 }
  0xe4   : > { %v527_v34 = vadd.f32 %v1920_v63, %v526_v32  ;;  %1563 = vmatprep.mubr.f32.mxu1 %v651_v29  ;;  %v654_v37 = vmax.f32 %v532_v31, 0.0  ;;  %v606_v55 = vpop.f32.mrf.mxu1 }
  0xe5   : > { %v1491_v35 = vpop.f32.mrf.mxu0  ;;  %1564 = vmatmul.mubr.f32.gmra.mxu1 %v652_v30  ;;  %v607_v11 = vadd.f32 %v1920_v63, %v606_v55  ;;  %v670_v22 = vmax.f32 %v612_v18, 0.0 }
  0xe6   : > { %v653_v36 = vmax.f32 %v527_v34, 0.0  ;;  %v542_v38 = vadd.f32 %v1491_v35, %v1920_v63  ;;  %v1515_v62 = vpop.f32.mrf.mxu1  ;;  %v958_v34 = vld [vmem:[%s2125_s5 + $0x8] sm:$0xff]  ;;  %v1975_v35 = vld [vmem:[%s2124_s4] ss:$0 sm:$0xff] }
  0xe7   : > { %v536_v39 = vpop.f32.mrf.mxu0  ;;  %v669_v15 = vmax.f32 %v607_v11, 0.0  ;;  %v622_v23 = vadd.f32 %v1515_v62, %v1920_v63  ;;  %1630 = vmatprep.subr.mxu0 %v958_v34 }
  0xe8   : > { %v537_v41 = vadd.f32 %v1920_v63, %v536_v39  ;;  %1566 = vmatprep.mubr.f32.mxu1 %v653_v36  ;;  %v656_v44 = vmax.f32 %v542_v38, 0.0  ;;  %v616_v4 = vpop.f32.mrf.mxu1  ;;  %1631 = vmatpush3.msra.mxu0 %v958_v34 }
  0xe9   : > { %v1494_v42 = vpop.f32.mrf.mxu0  ;;  %1567 = vmatmul.mubr.f32.gmra.mxu1 %v654_v37  ;;  %v617_v16 = vadd.f32 %v1920_v63, %v616_v4  ;;  %v672_v27 = vmax.f32 %v622_v23, 0.0 }
  0xea   : > { %v655_v43 = vmax.f32 %v537_v41, 0.0  ;;  %v552_v45 = vadd.f32 %v1494_v42, %v1920_v63  ;;  %v1518_v9 = vpop.f32.mrf.mxu1 }
  0xeb   : > { %v546_v46 = vpop.f32.mrf.mxu0  ;;  %v671_v20 = vmax.f32 %v617_v16, 0.0  ;;  %v632_v28 = vadd.f32 %v1518_v9, %v1920_v63 }
  0xec   : > { %v547_v48 = vadd.f32 %v1920_v63, %v546_v46  ;;  %1569 = vmatprep.mubr.f32.mxu1 %v655_v43  ;;  %v658_v52 = vmax.f32 %v552_v45, 0.0  ;;  %v626_v14 = vpop.f32.mrf.mxu1 }
  0xed   : > { %v1497_v49 = vpop.f32.mrf.mxu0  ;;  %1570 = vmatmul.mubr.f32.gmra.mxu1 %v656_v44  ;;  %v627_v21 = vadd.f32 %v1920_v63, %v626_v14  ;;  %v674_v30 = vmax.f32 %v632_v28, 0.0 }
  0xee   : > { %v657_v50 = vmax.f32 %v547_v48, 0.0  ;;  %v562_v53 = vadd.f32 %v1497_v49, %v1920_v63  ;;  %v1521_v19 = vpop.f32.mrf.mxu1 }
  0xef   : > { %v556_v54 = vpop.f32.mrf.mxu0  ;;  %v673_v25 = vmax.f32 %v627_v21, 0.0  ;;  %v642_v31 = vadd.f32 %v1521_v19, %v1920_v63 }
  0xf0   : > { %v557_v56 = vadd.f32 %v1920_v63, %v556_v54  ;;  %1572 = vmatprep.mubr.f32.mxu1 %v657_v50  ;;  %v660_v60 = vmax.f32 %v562_v53, 0.0  ;;  %v636_v24 = vpop.f32.mrf.mxu1 }
  0xf1   : > { %1573 = vmatmul.mubr.f32.gmra.mxu1 %v658_v52  ;;  %v637_v26 = vadd.f32 %v1920_v63, %v636_v24  ;;  %v676_v32 = vmax.f32 %v642_v31, 0.0  ;;  %v957_v63 = vld [vmem:[%s2125_s5] sm:$0xff] }
  0xf2   : > { %v659_v57 = vmax.f32 %v557_v56, 0.0  ;;  %1632 = vmatprep.subr.mxu0 %v957_v63 }
  0xf3   : > { %v675_v29 = vmax.f32 %v637_v26, 0.0  ;;  %1633 = vmatpush3.msra.mxu0 %v957_v63 }
  0xf4   : > { %1575 = vmatprep.mubr.f32.mxu1 %v659_v57 }
  0xf5   : > { %1576 = vmatmul.mubr.f32.gmra.mxu1 %v660_v60 }
  0xf6   : > { %1578 = vmatprep.mubr.f32.mxu1 %v661_v58 }
  0xf9   : > { %1579 = vmatmul.mubr.f32.gmra.mxu1 %v662_v2 }
  0xfa   : > { %1581 = vmatprep.mubr.f32.mxu1 %v663_v0 }
  0xfd   : > { %1582 = vmatmul.mubr.f32.gmra.mxu1 %v664_v8 }
  0xfe   : > { %1584 = vmatprep.mubr.f32.mxu1 %v665_v5 }
 0x101   : > { %1585 = vmatmul.mubr.f32.gmra.mxu1 %v666_v12 }
 0x102   : > { %1587 = vmatprep.mubr.f32.mxu1 %v667_v10 }
 0x105   : > { %1588 = vmatmul.mubr.f32.gmra.mxu1 %v668_v17 }
 0x106   : > { %1590 = vmatprep.mubr.f32.mxu1 %v669_v15 }
 0x109   : > { %1591 = vmatmul.mubr.f32.gmra.mxu1 %v670_v22 }
 0x10a   : > { %1593 = vmatprep.mubr.f32.mxu1 %v671_v20 }
 0x10d   : > { %1594 = vmatmul.mubr.f32.gmra.mxu1 %v672_v27 }
 0x10e   : > { %1596 = vmatprep.mubr.f32.mxu1 %v673_v25 }
 0x111   : > { %1597 = vmatmul.mubr.f32.gmra.mxu1 %v674_v30 }
 0x112   : > { %1599 = vmatprep.mubr.f32.mxu1 %v675_v29 }
 0x115   : > { %1600 = vmatmul.mubr.f32.gmra.mxu1 %v676_v32 }
 0x199   : > { %v1556_v36 = vpop.f32.mrf.mxu1 }
 0x19a   : > { %v772_v37 = vadd.f32 %v1556_v36, %v1975_v35 }
 0x19b   : > { %v766_v38 = vpop.f32.mrf.mxu1 }
 0x19c   : > { %v767_v39 = vadd.f32 %v1975_v35, %v766_v38  ;;  %v926_v42 = vmax.f32 %v772_v37, 0.0 }
 0x19d   : > { %v1559_v40 = vpop.f32.mrf.mxu1 }
 0x19e   : > { %v925_v41 = vmax.f32 %v767_v39, 0.0  ;;  %v782_v43 = vadd.f32 %v1559_v40, %v1975_v35 }
 0x19f   : > { %v776_v44 = vpop.f32.mrf.mxu1 }
 0x1a0   : > { %v777_v45 = vadd.f32 %v1975_v35, %v776_v44  ;;  %1634 = vmatprep.mubr.f32.mxu0 %v925_v41  ;;  %v928_v48 = vmax.f32 %v782_v43, 0.0 }
 0x1a1   : > { %v1562_v46 = vpop.f32.mrf.mxu1  ;;  %1635 = vmatmul.mubr.f32.vlgmr.msra.gmra.mxu0 %v926_v42 }
 0x1a2   : > { %v927_v47 = vmax.f32 %v777_v45, 0.0  ;;  %v792_v49 = vadd.f32 %v1562_v46, %v1975_v35 }
 0x1a3   : > { %v786_v50 = vpop.f32.mrf.mxu1 }
 0x1a4   : > { %v787_v51 = vadd.f32 %v1975_v35, %v786_v50  ;;  %1637 = vmatprep.mubr.f32.mxu0 %v927_v47  ;;  %v930_v54 = vmax.f32 %v792_v49, 0.0 }
 0x1a5   : > { %v1565_v52 = vpop.f32.mrf.mxu1  ;;  %1638 = vmatmul.mubr.f32.gmra.mxu0 %v928_v48 }
 0x1a6   : > { %v929_v53 = vmax.f32 %v787_v51, 0.0  ;;  %v802_v55 = vadd.f32 %v1565_v52, %v1975_v35 }
 0x1a7   : > { %v796_v56 = vpop.f32.mrf.mxu1 }
 0x1a8   : > { %v797_v57 = vadd.f32 %v1975_v35, %v796_v56  ;;  %1640 = vmatprep.mubr.f32.mxu0 %v929_v53  ;;  %v932_v60 = vmax.f32 %v802_v55, 0.0 }
 0x1a9   : > { %v1568_v58 = vpop.f32.mrf.mxu1  ;;  %1641 = vmatmul.mubr.f32.gmra.mxu0 %v930_v54 }
 0x1aa   : > { %v931_v59 = vmax.f32 %v797_v57, 0.0  ;;  %v812_v61 = vadd.f32 %v1568_v58, %v1975_v35 }
 0x1ab   : > { %v806_v62 = vpop.f32.mrf.mxu1 }
 0x1ac   : > { %v807_v0 = vadd.f32 %v1975_v35, %v806_v62  ;;  %1643 = vmatprep.mubr.f32.mxu0 %v931_v59  ;;  %v934_v3 = vmax.f32 %v812_v61, 0.0 }
 0x1ad   : > { %v1571_v1 = vpop.f32.mrf.mxu1  ;;  %1644 = vmatmul.mubr.f32.gmra.mxu0 %v932_v60 }
 0x1ae   : > { %v933_v2 = vmax.f32 %v807_v0, 0.0  ;;  %v822_v4 = vadd.f32 %v1571_v1, %v1975_v35 }
 0x1af   : > { %v816_v5 = vpop.f32.mrf.mxu1 }
 0x1b0   : > { %v817_v7 = vadd.f32 %v1975_v35, %v816_v5  ;;  %1646 = vmatprep.mubr.f32.mxu0 %v933_v2  ;;  %v936_v9 = vmax.f32 %v822_v4, 0.0 }
 0x1b1   : > { %v1574_v8 = vpop.f32.mrf.mxu1  ;;  %1647 = vmatmul.mubr.f32.gmra.mxu0 %v934_v3 }
 0x1b2   : > { %v935_v6 = vmax.f32 %v817_v7, 0.0  ;;  %v832_v10 = vadd.f32 %v1574_v8, %v1975_v35  ;;  %v2012_v7 = vld [vmem:[%s2126_s6] ss:$0 sm:$0xff] }
 0x1b3   : > { %v826_v11 = vpop.f32.mrf.mxu1 }
 0x1b4   : > { %v827_v12 = vadd.f32 %v1975_v35, %v826_v11  ;;  %1649 = vmatprep.mubr.f32.mxu0 %v935_v6  ;;  %v938_v15 = vmax.f32 %v832_v10, 0.0 }
 0x1b5   : > { %v1577_v13 = vpop.f32.mrf.mxu1  ;;  %1650 = vmatmul.mubr.f32.gmra.mxu0 %v936_v9 }
 0x1b6   : > { %v937_v14 = vmax.f32 %v827_v12, 0.0  ;;  %v842_v16 = vadd.f32 %v1577_v13, %v1975_v35 }
 0x1b7   : > { %v836_v17 = vpop.f32.mrf.mxu1 }
 0x1b8   : > { %v837_v18 = vadd.f32 %v1975_v35, %v836_v17  ;;  %1652 = vmatprep.mubr.f32.mxu0 %v937_v14  ;;  %v940_v21 = vmax.f32 %v842_v16, 0.0 }
 0x1b9   : > { %v1580_v19 = vpop.f32.mrf.mxu1  ;;  %1653 = vmatmul.mubr.f32.gmra.mxu0 %v938_v15 }
 0x1ba   : > { %v939_v20 = vmax.f32 %v837_v18, 0.0  ;;  %v852_v22 = vadd.f32 %v1580_v19, %v1975_v35 }
 0x1bb   : > { %v846_v23 = vpop.f32.mrf.mxu1 }
 0x1bc   : > { %v847_v24 = vadd.f32 %v1975_v35, %v846_v23  ;;  %1655 = vmatprep.mubr.f32.mxu0 %v939_v20  ;;  %v942_v27 = vmax.f32 %v852_v22, 0.0 }
 0x1bd   : > { %v1583_v25 = vpop.f32.mrf.mxu1  ;;  %1656 = vmatmul.mubr.f32.gmra.mxu0 %v940_v21 }
 0x1be   : > { %v941_v26 = vmax.f32 %v847_v24, 0.0  ;;  %v862_v28 = vadd.f32 %v1583_v25, %v1975_v35 }
 0x1bf   : > { %v856_v29 = vpop.f32.mrf.mxu1 }
 0x1c0   : > { %v857_v30 = vadd.f32 %v1975_v35, %v856_v29  ;;  %1658 = vmatprep.mubr.f32.mxu0 %v941_v26  ;;  %v944_v33 = vmax.f32 %v862_v28, 0.0 }
 0x1c1   : > { %v1586_v31 = vpop.f32.mrf.mxu1  ;;  %1659 = vmatmul.mubr.f32.gmra.mxu0 %v942_v27 }
 0x1c2   : > { %v943_v32 = vmax.f32 %v857_v30, 0.0  ;;  %v872_v34 = vadd.f32 %v1586_v31, %v1975_v35 }
 0x1c3   : > { %v866_v63 = vpop.f32.mrf.mxu1 }
 0x1c4   : > { %v867_v36 = vadd.f32 %v1975_v35, %v866_v63  ;;  %1661 = vmatprep.mubr.f32.mxu0 %v943_v32  ;;  %v946_v39 = vmax.f32 %v872_v34, 0.0 }
 0x1c5   : > { %v1589_v37 = vpop.f32.mrf.mxu1  ;;  %1662 = vmatmul.mubr.f32.gmra.mxu0 %v944_v33 }
 0x1c6   : > { %v945_v38 = vmax.f32 %v867_v36, 0.0  ;;  %v882_v40 = vadd.f32 %v1589_v37, %v1975_v35 }
 0x1c7   : > { %v876_v41 = vpop.f32.mrf.mxu1 }
 0x1c8   : > { %v877_v42 = vadd.f32 %v1975_v35, %v876_v41  ;;  %1664 = vmatprep.mubr.f32.mxu0 %v945_v38  ;;  %v948_v45 = vmax.f32 %v882_v40, 0.0 }
 0x1c9   : > { %v1592_v43 = vpop.f32.mrf.mxu1  ;;  %1665 = vmatmul.mubr.f32.gmra.mxu0 %v946_v39 }
 0x1ca   : > { %v947_v44 = vmax.f32 %v877_v42, 0.0  ;;  %v892_v46 = vadd.f32 %v1592_v43, %v1975_v35 }
 0x1cb   : > { %v886_v47 = vpop.f32.mrf.mxu1 }
 0x1cc   : > { %v887_v48 = vadd.f32 %v1975_v35, %v886_v47  ;;  %1667 = vmatprep.mubr.f32.mxu0 %v947_v44  ;;  %v950_v51 = vmax.f32 %v892_v46, 0.0 }
 0x1cd   : > { %v1595_v49 = vpop.f32.mrf.mxu1  ;;  %1668 = vmatmul.mubr.f32.gmra.mxu0 %v948_v45 }
 0x1ce   : > { %v949_v50 = vmax.f32 %v887_v48, 0.0  ;;  %v902_v52 = vadd.f32 %v1595_v49, %v1975_v35 }
 0x1cf   : > { %v896_v53 = vpop.f32.mrf.mxu1 }
 0x1d0   : > { %v897_v54 = vadd.f32 %v1975_v35, %v896_v53  ;;  %1670 = vmatprep.mubr.f32.mxu0 %v949_v50  ;;  %v952_v57 = vmax.f32 %v902_v52, 0.0 }
 0x1d1   : > { %v1598_v55 = vpop.f32.mrf.mxu1  ;;  %1671 = vmatmul.mubr.f32.gmra.mxu0 %v950_v51 }
 0x1d2   : > { %v951_v56 = vmax.f32 %v897_v54, 0.0  ;;  %v912_v58 = vadd.f32 %v1598_v55, %v1975_v35 }
 0x1d3   : > { %v906_v59 = vpop.f32.mrf.mxu1 }
 0x1d4   : > { %v907_v60 = vadd.f32 %v1975_v35, %v906_v59  ;;  %1673 = vmatprep.mubr.f32.mxu0 %v951_v56  ;;  %v954_v0 = vmax.f32 %v912_v58, 0.0 }
 0x1d5   : > { %v1601_v61 = vpop.f32.mrf.mxu1  ;;  %1674 = vmatmul.mubr.f32.gmra.mxu0 %v952_v57 }
 0x1d6   : > { %v953_v62 = vmax.f32 %v907_v60, 0.0  ;;  %v922_v1 = vadd.f32 %v1601_v61, %v1975_v35 }
 0x1d7   : > { %v916_v2 = vpop.f32.mrf.mxu1 }
 0x1d8   : > { %v917_v3 = vadd.f32 %v1975_v35, %v916_v2  ;;  %1676 = vmatprep.mubr.f32.mxu0 %v953_v62  ;;  %v956_v5 = vmax.f32 %v922_v1, 0.0 }
 0x1d9   : > { %1677 = vmatmul.mubr.f32.gmra.mxu0 %v954_v0 }
 0x1da   : > { %v955_v4 = vmax.f32 %v917_v3, 0.0 }
 0x1dc   : > { %1679 = vmatprep.mubr.f32.mxu0 %v955_v4 }
 0x1dd   : > { %1680 = vmatmul.mubr.f32.gmra.mxu0 %v956_v5 }
 0x261   : > { %v1636_v35 = vpop.f32.mrf.mxu0 }
 0x262   : > { %v1052_v8 = vadd.f32 %v1636_v35, %v2012_v7 }
 0x263   : > { %v1046_v6 = vpop.f32.mrf.mxu0 }
 0x264   : > { %1207 = vst.msk [vmem:[%s2019_s25 + $0x8] sm:$0xff] %vm1205_vm1, %v1052_v8  ;;  %v1047_v9 = vadd.f32 %v2012_v7, %v1046_v6 }
 0x265   : > { %v1639_v10 = vpop.f32.mrf.mxu0 }
 0x266   : > { %1206 = vst.msk [vmem:[%s2019_s25] sm:$0xff] %vm1205_vm1, %v1047_v9  ;;  %v1062_v11 = vadd.f32 %v1639_v10, %v2012_v7 }
 0x267   : > { %v1056_v12 = vpop.f32.mrf.mxu0 }
 0x268   : > { %1209 = vst.msk [vmem:[%s2019_s25 + $0x18] sm:$0xff] %vm1205_vm1, %v1062_v11  ;;  %v1057_v13 = vadd.f32 %v2012_v7, %v1056_v12 }
 0x269   : > { %v1642_v14 = vpop.f32.mrf.mxu0 }
 0x26a   : > { %1208 = vst.msk [vmem:[%s2019_s25 + $0x10] sm:$0xff] %vm1205_vm1, %v1057_v13  ;;  %v1072_v15 = vadd.f32 %v1642_v14, %v2012_v7 }
 0x26b   : > { %v1066_v16 = vpop.f32.mrf.mxu0 }
 0x26c   : > { %1211 = vst.msk [vmem:[%s2019_s25 + $0x28] sm:$0xff] %vm1205_vm1, %v1072_v15  ;;  %v1067_v17 = vadd.f32 %v2012_v7, %v1066_v16 }
 0x26d   : > { %v1645_v18 = vpop.f32.mrf.mxu0 }
 0x26e   : > { %1210 = vst.msk [vmem:[%s2019_s25 + $0x20] sm:$0xff] %vm1205_vm1, %v1067_v17  ;;  %v1082_v19 = vadd.f32 %v1645_v18, %v2012_v7 }
 0x26f   : > { %v1076_v20 = vpop.f32.mrf.mxu0 }
 0x270   : > { %1213 = vst.msk [vmem:[%s2019_s25 + $0x38] sm:$0xff] %vm1205_vm1, %v1082_v19  ;;  %v1077_v21 = vadd.f32 %v2012_v7, %v1076_v20 }
 0x271   : > { %v1648_v22 = vpop.f32.mrf.mxu0 }
 0x272   : > { %1212 = vst.msk [vmem:[%s2019_s25 + $0x30] sm:$0xff] %vm1205_vm1, %v1077_v21  ;;  %v1092_v23 = vadd.f32 %v1648_v22, %v2012_v7 }
 0x273   : > { %v1086_v24 = vpop.f32.mrf.mxu0 }
 0x274   : > { %1215 = vst.msk [vmem:[%s2019_s25 + $0x48] sm:$0xff] %vm1205_vm1, %v1092_v23  ;;  %v1087_v25 = vadd.f32 %v2012_v7, %v1086_v24 }
 0x275   : > { %v1651_v26 = vpop.f32.mrf.mxu0 }
 0x276   : > { %1214 = vst.msk [vmem:[%s2019_s25 + $0x40] sm:$0xff] %vm1205_vm1, %v1087_v25  ;;  %v1102_v27 = vadd.f32 %v1651_v26, %v2012_v7 }
 0x277   : > { %v1096_v28 = vpop.f32.mrf.mxu0 }
 0x278   : > { %1217 = vst.msk [vmem:[%s2019_s25 + $0x58] sm:$0xff] %vm1205_vm1, %v1102_v27  ;;  %v1097_v29 = vadd.f32 %v2012_v7, %v1096_v28 }
 0x279   : > { %v1654_v30 = vpop.f32.mrf.mxu0 }
 0x27a   : > { %1216 = vst.msk [vmem:[%s2019_s25 + $0x50] sm:$0xff] %vm1205_vm1, %v1097_v29  ;;  %v1112_v31 = vadd.f32 %v1654_v30, %v2012_v7 }
 0x27b   : > { %v1106_v32 = vpop.f32.mrf.mxu0 }
 0x27c   : > { %1219 = vst.msk [vmem:[%s2019_s25 + $0x68] sm:$0xff] %vm1205_vm1, %v1112_v31  ;;  %v1107_v33 = vadd.f32 %v2012_v7, %v1106_v32 }
 0x27d   : > { %v1657_v34 = vpop.f32.mrf.mxu0 }
 0x27e   : > { %1218 = vst.msk [vmem:[%s2019_s25 + $0x60] sm:$0xff] %vm1205_vm1, %v1107_v33  ;;  %v1122_v63 = vadd.f32 %v1657_v34, %v2012_v7 }
 0x27f   : > { %v1116_v36 = vpop.f32.mrf.mxu0 }
 0x280   : > { %1221 = vst.msk [vmem:[%s2019_s25 + $0x78] sm:$0xff] %vm1205_vm1, %v1122_v63  ;;  %v1117_v37 = vadd.f32 %v2012_v7, %v1116_v36 }
 0x281   : > { %v1660_v38 = vpop.f32.mrf.mxu0 }
 0x282   : > { %1220 = vst.msk [vmem:[%s2019_s25 + $0x70] sm:$0xff] %vm1205_vm1, %v1117_v37  ;;  %v1132_v39 = vadd.f32 %v1660_v38, %v2012_v7 }
 0x283   : > { %v1126_v40 = vpop.f32.mrf.mxu0 }
 0x284   : > { %1223 = vst.msk [vmem:[%s2019_s25 + $0x88] sm:$0xff] %vm1205_vm1, %v1132_v39  ;;  %v1127_v41 = vadd.f32 %v2012_v7, %v1126_v40 }
 0x285   : > { %v1663_v42 = vpop.f32.mrf.mxu0 }
 0x286   : > { %1222 = vst.msk [vmem:[%s2019_s25 + $0x80] sm:$0xff] %vm1205_vm1, %v1127_v41  ;;  %v1142_v43 = vadd.f32 %v1663_v42, %v2012_v7 }
 0x287   : > { %v1136_v44 = vpop.f32.mrf.mxu0 }
 0x288   : > { %1225 = vst.msk [vmem:[%s2019_s25 + $0x98] sm:$0xff] %vm1205_vm1, %v1142_v43  ;;  %v1137_v45 = vadd.f32 %v2012_v7, %v1136_v44 }
 0x289   : > { %v1666_v46 = vpop.f32.mrf.mxu0 }
 0x28a   : > { %1224 = vst.msk [vmem:[%s2019_s25 + $0x90] sm:$0xff] %vm1205_vm1, %v1137_v45  ;;  %v1152_v47 = vadd.f32 %v1666_v46, %v2012_v7 }
 0x28b   : > { %v1146_v48 = vpop.f32.mrf.mxu0 }
 0x28c   : > { %1227 = vst.msk [vmem:[%s2019_s25 + $0xa8] sm:$0xff] %vm1205_vm1, %v1152_v47  ;;  %v1147_v49 = vadd.f32 %v2012_v7, %v1146_v48 }
 0x28d   : > { %v1669_v50 = vpop.f32.mrf.mxu0 }
 0x28e   : > { %1226 = vst.msk [vmem:[%s2019_s25 + $0xa0] sm:$0xff] %vm1205_vm1, %v1147_v49  ;;  %v1162_v51 = vadd.f32 %v1669_v50, %v2012_v7 }
 0x28f   : > { %v1156_v52 = vpop.f32.mrf.mxu0 }
 0x290   : > { %1229 = vst.msk [vmem:[%s2019_s25 + $0xb8] sm:$0xff] %vm1205_vm1, %v1162_v51  ;;  %v1157_v53 = vadd.f32 %v2012_v7, %v1156_v52 }
 0x291   : > { %v1672_v54 = vpop.f32.mrf.mxu0 }
 0x292   : > { %1228 = vst.msk [vmem:[%s2019_s25 + $0xb0] sm:$0xff] %vm1205_vm1, %v1157_v53  ;;  %v1172_v55 = vadd.f32 %v1672_v54, %v2012_v7 }
 0x293   : > { %v1166_v56 = vpop.f32.mrf.mxu0 }
 0x294   : > { %1231 = vst.msk [vmem:[%s2019_s25 + $0xc8] sm:$0xff] %vm1205_vm1, %v1172_v55  ;;  %v1167_v57 = vadd.f32 %v2012_v7, %v1166_v56 }
 0x295   : > { %v1675_v58 = vpop.f32.mrf.mxu0 }
 0x296   : > { %1230 = vst.msk [vmem:[%s2019_s25 + $0xc0] sm:$0xff] %vm1205_vm1, %v1167_v57  ;;  %v1182_v59 = vadd.f32 %v1675_v58, %v2012_v7 }
 0x297   : > { %v1176_v60 = vpop.f32.mrf.mxu0 }
 0x298   : > { %1233 = vst.msk [vmem:[%s2019_s25 + $0xd8] sm:$0xff] %vm1205_vm1, %v1182_v59  ;;  %v1177_v61 = vadd.f32 %v2012_v7, %v1176_v60 }
 0x299   : > { %v1678_v62 = vpop.f32.mrf.mxu0 }
 0x29a   : > { %1232 = vst.msk [vmem:[%s2019_s25 + $0xd0] sm:$0xff] %vm1205_vm1, %v1177_v61  ;;  %v1192_v0 = vadd.f32 %v1678_v62, %v2012_v7 }
 0x29b   : > { %v1186_v1 = vpop.f32.mrf.mxu0 }
 0x29c   : > { %1235 = vst.msk [vmem:[%s2019_s25 + $0xe8] sm:$0xff] %vm1205_vm1, %v1192_v0  ;;  %v1187_v2 = vadd.f32 %v2012_v7, %v1186_v1 }
 0x29d   : > { %v1681_v3 = vpop.f32.mrf.mxu0 }
 0x29e   : > { %1234 = vst.msk [vmem:[%s2019_s25 + $0xe0] sm:$0xff] %vm1205_vm1, %v1187_v2  ;;  %v1202_v4 = vadd.f32 %v1681_v3, %v2012_v7 }
 0x29f   : > { %v1196_v5 = vpop.f32.mrf.mxu0 }
 0x2a0   : > { %1237 = vst.msk [vmem:[%s2019_s25 + $0xf8] sm:$0xff] %vm1205_vm1, %v1202_v4  ;;  %v1197_v35 = vadd.f32 %v2012_v7, %v1196_v5 }
 0x2a2   : > { %1236 = vst.msk [vmem:[%s2019_s25 + $0xf0] sm:$0xff] %vm1205_vm1, %v1197_v35 }
 0x2a3 PF: > { %s17_s24 = sadd.s32 1, %s1700_s24  }
 0x2a4   : > { %p14_p4 = scmp.ge.s32.totalorder %s17_s24, 4  }
 0x2a6   :  { %16 = sbr.rel (!%p14_p4) target bundleno = 1 (0x1), region = 78 }

</bundles_post_ra>
